<compile_context>
chip_gen: v7x
topology: tpu7x:2x2x1
jax: 0.10.0
libtpu: 0.0.40
codegen_flags: <defaults>
</compile_context>

<pallas_src>
import math

import jax
import jax.numpy as jnp
from jax.experimental import pallas as pl
from jax.experimental.pallas import tpu as pltpu


def _round_up(x, m):
    return ((x + m - 1) // m) * m


def _linear_kernel(x_ref, w_ref, b_ref, o_ref, acc_ref):
    # Grid = (M tiles, N tiles, K tiles); K is the last ("arbitrary") axis.
    k = pl.program_id(2)

    # Weight is pre-transposed in the wrapper to (K, N): plain NN matmul.
    prod = jnp.dot(x_ref[...], w_ref[...], preferred_element_type=jnp.float32)

    @pl.when(k == 0)
    def _():
        acc_ref[...] = prod                      # no zero-fill / RMW on step 0

    @pl.when(k != 0)
    def _():
        acc_ref[...] += prod

    @pl.when(k == pl.num_programs(2) - 1)
    def _():
        out = acc_ref[...] + b_ref[...].astype(jnp.float32)
        o_ref[...] = out.astype(o_ref.dtype)


def interaction_encoder(interaction, weight, bias):
    """Pallas equivalent of InteractionEncoder.forward (nn.Linear).

    Args:
      interaction: (..., in_dim) array.
      weight: (out_dim, in_dim)  -- same layout as torch nn.Linear.weight.
      bias:   (out_dim,)         -- same layout as torch nn.Linear.bias.
    Returns:
      (..., out_dim) array, same dtype as interaction.
    """
    in_dim = interaction.shape[-1]
    out_dim = weight.shape[0]
    lead = interaction.shape[:-1]
    dtype = interaction.dtype

    x2d = interaction.reshape(-1, in_dim)
    m = x2d.shape[0]

    # Lane-dense padded dims.  out_p is a multiple of 256 so N tiles always
    # fill the 256-wide MXU columns on v6e/v7x (also fine on v5e's 4x128 MXU).
    in_p = _round_up(in_dim, 128)
    out_p = _round_up(out_dim, 256)

    # Tile sizes: largest that divide the padded dims, capped so the
    # double-buffered working set (x/w/out blocks + f32 acc) stays ~12 MiB.
    tk = next(t for t in (512, 256, 128) if in_p % t == 0)
    tn = next(t for t in (512, 256) if out_p % t == 0)
    tm = min(1024, _round_up(m, 8))

    m_tiles = pl.cdiv(m, tm)
    n_tiles = out_p // tn
    # v7x shards "parallel" grid axes across its 2 TensorCores; make sure the
    # M x N grid has at least 2 tiles so the second core isn't idle.
    if m_tiles * n_tiles == 1:
        tn = out_p // 2                          # still a multiple of 128
        n_tiles = 2
    k_tiles = in_p // tk
    grid = (m_tiles, n_tiles, k_tiles)

    # Zero-pad only where needed:
    #  * K (in_dim) padding must be zeros (contributes nothing to the dot).
    #  * N (out_dim) padding is sliced off at the end.
    #  * M is NOT padded: tail-block garbage rows never land in the (m, out_p)
    #    output (each output row depends only on its own x row).
    x_pad = x2d if in_p == in_dim else jnp.pad(x2d, ((0, 0), (0, in_p - in_dim)))
    w_pad = weight
    if (out_p, in_p) != (out_dim, in_dim):
        w_pad = jnp.pad(weight, ((0, out_p - out_dim), (0, in_p - in_dim)))
    w_t = w_pad.T                                # one-time (in_p, out_p) copy
    b_pad = bias if out_p == out_dim else jnp.pad(bias, (0, out_p - out_dim))
    b2d = b_pad.reshape(1, out_p)

    # HBM traffic including re-streaming (x re-read per N tile, w per M tile).
    cost = pl.CostEstimate(
        flops=2 * m * in_p * out_p,
        transcendentals=0,
        bytes_accessed=(
            m * in_p * x_pad.dtype.itemsize * n_tiles
            + in_p * out_p * w_t.dtype.itemsize * m_tiles
            + out_p * b2d.dtype.itemsize
            + m * out_p * jnp.dtype(dtype).itemsize
        ),
    )

    out = pl.pallas_call(
        _linear_kernel,
        out_shape=jax.ShapeDtypeStruct((m, out_p), dtype),
        grid_spec=pltpu.PrefetchScalarGridSpec(
            num_scalar_prefetch=0,
            grid=grid,
            in_specs=[
                pl.BlockSpec((tm, tk), lambda i, j, k: (i, k)),
                pl.BlockSpec((tk, tn), lambda i, j, k: (k, j)),
                pl.BlockSpec((1, tn), lambda i, j, k: (0, j)),
            ],
            out_specs=pl.BlockSpec((tm, tn), lambda i, j, k: (i, j)),
            scratch_shapes=[pltpu.VMEM((tm, tn), jnp.float32)],
        ),
        compiler_params=pltpu.CompilerParams(
            dimension_semantics=("parallel", "parallel", "arbitrary"),
            vmem_limit_bytes=32 * 1024 * 1024,   # safe on v7x's 64 MiB VMEM too
        ),
        cost_estimate=cost,
    )(x_pad, w_t, b2d)

    if out_p != out_dim:
        out = out[:, :out_dim]
    return out.reshape(*lead, out_dim)


def init_params(key, in_dim, out_dim, dtype=jnp.float32):
    # Deterministic init mirroring nn.Linear's default: U(-1/sqrt(in), 1/sqrt(in)).
    kw, kb = jax.random.split(key)
    bound = 1.0 / math.sqrt(in_dim)
    weight = jax.random.uniform(kw, (out_dim, in_dim), dtype,
                                minval=-bound, maxval=bound)
    bias = jax.random.uniform(kb, (out_dim,), dtype,
                              minval=-bound, maxval=bound)
    return weight, bias


if __name__ == "__main__":
    key = jax.random.PRNGKey(0)
    k_x, k_p = jax.random.split(key)

    batch, seq, in_dim, out_dim = 2, 8, 32, 64
    interaction = jax.random.normal(k_x, (batch, seq, in_dim), jnp.float32)
    weight, bias = init_params(k_p, in_dim, out_dim)

    y = interaction_encoder(interaction, weight, bias)
    jax.block_until_ready(y)

    # Reference check against plain JAX (same math as torch nn.Linear).
    y_ref = interaction @ weight.T + bias
    assert y.shape == (batch, seq, out_dim)
    assert jnp.allclose(y, y_ref, atol=1e-5, rtol=1e-5)

    print("KERNEL_OK")
</pallas_src>

<mosaic_0001>
module attributes {stable_mosaic.version = 11 : i64} {
  func.func @_linear_kernel(%arg0: i32, %arg1: i32, %arg2: i32, %arg3: memref<16x128xf32, #tpu.memory_space<vmem>>, %arg4: memref<128x128xf32, #tpu.memory_space<vmem>>, %arg5: memref<1x128xf32, #tpu.memory_space<vmem>>, %arg6: memref<16x128xf32, #tpu.memory_space<vmem>>, %arg7: memref<16x128xf32, #tpu.memory_space<vmem>>) attributes {dimension_semantics = [#tpu.dimension_semantics<parallel>, #tpu.dimension_semantics<parallel>, #tpu.dimension_semantics<arbitrary>], iteration_bounds = array<i64: 1, 2, 1>, scalar_prefetch = 0 : i64, scratch_operands = 1 : i64, tpu.core_type = #tpu.core_type<tc>, window_params = [{transform_indices = @transform_0, window_bounds = array<i64: 16, 128>}, {transform_indices = @transform_1, window_bounds = array<i64: 128, 128>}, {transform_indices = @transform_2, window_bounds = array<i64: 1, 128>}, {transform_indices = @transform_3, window_bounds = array<i64: 16, 128>}]} {
    %c0 = arith.constant 0 : index
    %c0_0 = arith.constant 0 : index
    %0 = vector.load %arg3[%c0, %c0_0] : memref<16x128xf32, #tpu.memory_space<vmem>>, vector<16x128xf32>
    %c0_1 = arith.constant 0 : index
    %c0_2 = arith.constant 0 : index
    %1 = vector.load %arg4[%c0_1, %c0_2] : memref<128x128xf32, #tpu.memory_space<vmem>>, vector<128x128xf32>
    %cst = arith.constant dense<0.000000e+00> : vector<16x128xf32>
    %2 = tpu.matmul %0, %1, %cst {dimension_numbers = #tpu.dot_dimension_numbers<[1], [0], [0], [1], [0, 0, 1, 1], [], []>} : vector<16x128xf32>, vector<128x128xf32>, vector<16x128xf32> -> vector<16x128xf32>
    %c0_i32 = arith.constant 0 : i32
    %3 = arith.cmpi eq, %arg2, %c0_i32 : i32
    %4 = arith.extui %3 : i1 to i32
    %c0_i32_3 = arith.constant 0 : i32
    %5 = arith.cmpi ne, %4, %c0_i32_3 : i32
    scf.if %5 {
      %c0_8 = arith.constant 0 : index
      %c0_9 = arith.constant 0 : index
      %12 = vector.load %arg7[%c0_8, %c0_9] : memref<16x128xf32, #tpu.memory_space<vmem>>, vector<16x128xf32>
      tpu.vector_store %arg7[%c0_8, %c0_9], %2 {strides = array<i32>} : memref<16x128xf32, #tpu.memory_space<vmem>>, vector<16x128xf32>,
    } else {
    }
    %c0_i32_4 = arith.constant 0 : i32
    %6 = arith.cmpi ne, %arg2, %c0_i32_4 : i32
    %7 = arith.extui %6 : i1 to i32
    %c0_i32_5 = arith.constant 0 : i32
    %8 = arith.cmpi ne, %7, %c0_i32_5 : i32
    scf.if %8 {
      %c0_8 = arith.constant 0 : index
      %c0_9 = arith.constant 0 : index
      %12 = vector.load %arg7[%c0_8, %c0_9] : memref<16x128xf32, #tpu.memory_space<vmem>>, vector<16x128xf32>
      %13 = arith.addf %12, %2 : vector<16x128xf32>
      %c0_10 = arith.constant 0 : index
      %c0_11 = arith.constant 0 : index
      %14 = vector.load %arg7[%c0_10, %c0_11] : memref<16x128xf32, #tpu.memory_space<vmem>>, vector<16x128xf32>
      tpu.vector_store %arg7[%c0_10, %c0_11], %13 {strides = array<i32>} : memref<16x128xf32, #tpu.memory_space<vmem>>, vector<16x128xf32>,
    } else {
    }
    %c0_i32_6 = arith.constant 0 : i32
    %9 = arith.cmpi eq, %arg2, %c0_i32_6 : i32
    %10 = arith.extui %9 : i1 to i32
    %c0_i32_7 = arith.constant 0 : i32
    %11 = arith.cmpi ne, %10, %c0_i32_7 : i32
    scf.if %11 {
      %c0_8 = arith.constant 0 : index
      %c0_9 = arith.constant 0 : index
      %12 = vector.load %arg7[%c0_8, %c0_9] : memref<16x128xf32, #tpu.memory_space<vmem>>, vector<16x128xf32>
      %c0_10 = arith.constant 0 : index
      %c0_11 = arith.constant 0 : index
      %13 = vector.load %arg5[%c0_10, %c0_11] : memref<1x128xf32, #tpu.memory_space<vmem>>, vector<1x128xf32>
      %14 = vector.broadcast %13 : vector<1x128xf32> to vector<16x128xf32>
      %15 = arith.addf %12, %14 : vector<16x128xf32>
      %c0_12 = arith.constant 0 : index
      %c0_13 = arith.constant 0 : index
      %16 = vector.load %arg6[%c0_12, %c0_13] : memref<16x128xf32, #tpu.memory_space<vmem>>, vector<16x128xf32>
      tpu.vector_store %arg6[%c0_12, %c0_13], %15 {strides = array<i32>} : memref<16x128xf32, #tpu.memory_space<vmem>>, vector<16x128xf32>,
    } else {
    }
    return
  }
  func.func @transform_0(%arg0: i32, %arg1: i32, %arg2: i32) -> (i32, i32) {
    %c0_i32 = arith.constant 0 : i32
    return %arg0, %arg2 : i32, i32
  }
  func.func @transform_1(%arg0: i32, %arg1: i32, %arg2: i32) -> (i32, i32) {
    %c0_i32 = arith.constant 0 : i32
    return %arg2, %arg1 : i32, i32
  }
  func.func @transform_2(%arg0: i32, %arg1: i32, %arg2: i32) -> (i32, i32) {
    %c0_i32 = arith.constant 0 : i32
    %c0_i32_0 = arith.constant 0 : i32
    return %c0_i32, %arg1 : i32, i32
  }
  func.func @transform_3(%arg0: i32, %arg1: i32, %arg2: i32) -> (i32, i32) {
    %c0_i32 = arith.constant 0 : i32
    return %arg0, %arg1 : i32, i32
  }
}

</mosaic_0001>

<bundles_post_ra>
// kernel: tpu_custom_call.1
= control target key start
LH: loop header
LB: loop body
LE: loop exit
PB: predicated region body
PF: predicated region fallthrough
CT: control target
= control target key end

     0   :  { %8 = vsyncpa [#allocation4], 0  ;;  %s1115_s0 = inlined_call_operand.hbm [shape: f32[16,128], index: 0, kind: input, shape index: {}]   ;;  %s1116_s1 = inlined_call_operand.hbm [shape: f32[128,256], index: 1, kind: input, shape index: {}]   ;;  %s1117_s2 = inlined_call_operand.vmem [shape: f32[1,256], index: 2, kind: input, shape index: {}]   ;;  %s1118_s3 = inlined_call_operand.hbm [shape: f32[16,256], index: 3, kind: output, shape index: {}]  }
   0x1   :  { %9 = vsyncpa [#allocation7], 0 }
   0x2   :  { %11 = vsyncpa [#allocation7 + $0x1], 0 }
   0x3   :  { %12 = vsyncpa [#allocation5], 0 }
   0x4   :  { %14 = vsyncpa [#allocation5 + $0x1], 0  ;;  %s866_s12 = smov 0   ;;  %s868_s13 = smov 0  }
   0x5   :  { %s870_s14 = smov 0   ;;  %s872_s15 = smov 0  }
   0x6   :  { %s874_s16 = smov 0   ;;  %s876_s17 = smov 0  }
   0x7 LB: > { %s511_s18 = sadd.s32 4294967295, %s835_s17   ;;  %s512_s19 = sadd.s32 4294967294, %s835_s17   ;;  %s835_s17 = sphi %s876_s17, %s20_s17   ;;  %s831_s16 = sphi %s874_s16, %s1146_s16   ;;  %s827_s15 = sphi %s872_s15, %s1145_s15   ;;  %s823_s14 = sphi %s870_s14, %s1144_s14   ;;  %s819_s13 = sphi %s868_s13, %s1143_s13   ;;  %s815_s12 = sphi %s866_s12, %s1142_s12  }
   0x8   : > { %p83_p0 = scmp.ne.s32.totalorder %s823_s14, %s819_s13  ;;  %p84_p1 = scmp.eq.s32.totalorder %s835_s17, 0 }
   0x9   : > { %p89_p2 = scmp.ne.s32.totalorder %s819_s13, %s815_s12  ;;  %p903_p3 = scmp.eq.s32.totalorder %s511_s18, 0 }
   0xa   : > { %p907_p4 = por %p84_p1, %p83_p0  ;;  %p141_p5 = scmp.eq.s32.totalorder %s511_s18, 1 }
   0xb   : > { %s1126_s20 = scalar_select %p903_p3, 1, 0 }
   0xc   : > { %p913_p6 = por %p903_p3, %p89_p2  ;;  %p147_p7 = scmp.eq.s32.totalorder %s512_s19, 1 }
   0xd   : > { %p917_p8 = por %p141_p5, %p83_p0  ;;  %p513_p9 = scmp.ge.s32.totalorder %s835_s17, 1 }
   0xe   : > { %s1128_s22 = scalar_select %p913_p6, 1, 0 }
   0xf   : > { %s1129_s23 = scalar_select %p917_p8, 1, 0 }
  0x10   : > { %p922_p10 = por %p147_p7, %p89_p2  ;;  %p154_p11 = scmp.lt.s32.totalorder %s835_s17, 3 }
  0x11   : > { %s837_s26 = smov [#allocation3]   ;;  %p633_p1 = scmp.lt.s32.totalorder %s835_s17, 2 }
  0x12   : > { %s1130_s24 = scalar_select %p922_p10, 1, 0 }
  0x13   : > { %p927_p12 = pnand %p513_p9, %p154_p11  ;;  %s170_s27 = sshll.u32 %s837_s26, 4  ;;  %s931_s27 = int_to_ptr.vmem [resolvable:$true] %s170_s27 }
  0x14   : > { %p945_p2 = pnand %p633_p1, %p907_p4  ;;  %s35_s30 = sadd.s32 1, %s831_s16 }
  0x15   : > { %s1131_s25 = scalar_select %p927_p12, 1, 0 }
  0x16   : > { %p620_p13 = pneg %p927_p12  ;;  %s691_s6 = scalar_lea.hbm %s1115_s0, 256 }
  0x17   : > { %s1133_s29 = scalar_select %p945_p2, 1, 0 }
  0x18   : > { %p939_p5 = pnand %p620_p13, %p903_p3  ;;  %p692_p7 = scmp.ne.s32.totalorder %s1115_s0, %s691_s6 }
  0x19   : > { %p698_p4 = scmp.lt.u32.totalorder %s691_s6, %s1115_s0 }
  0x1a   : > { %p693_p9 = pneg %p939_p5 }
  0x1c   : > { %p694_p11 = pnand %p693_p9, %p692_p7 }
  0x1e   : > { %p695_p13 = pneg %p694_p11 }
  0x20   : > { %p700_p1 = pnand %p698_p4, %p695_p13 }
  0x22   : > { %703 = shalt.err (!%p700_p1)
}
  0x23   : > { %s704_s11 = scalar_lea.vmem %s931_s27, 256  ;;  %p712_p6 = scmp.lt.s32.totalorder %s931_s27, %s931_s27 }
  0x24   : > { %p705_p0 = scmp.ne.s32.totalorder %s931_s27, %s704_s11  ;;  %p713_p3 = scmp.lt.s32.totalorder %s704_s11, %s704_s11 }
  0x26   : > { %p707_p10 = pnand %p705_p0, %p693_p9  ;;  %p714_p12 = por %p713_p3, %p712_p6 }
  0x28   : > { %p708_p8 = pneg %p707_p10 }
  0x2a   : > { %p715_p2 = pnand %p714_p12, %p708_p8 }
  0x2c   : > { %718 = shalt.err (!%p715_p2)
}
  0x2d   : > { %s1125_s18 = smov 128   ;;  %s839_s19 = smov 8  }
  0x2e   : > { %623 = dma.hbm_to_vmem [thread:$0]  (!%p939_p5), %s1115_s0, 256, %s931_s27, [#allocation4], %s1125_s18, %s1125_s18, %s839_s19  }
  0x2f   : > { %p37_p3 = scmp.ge.s32.totalorder %s35_s30, 2  ;;  %s76_s4 = sadd.s32 1, %s823_s14 }
  0x30   : > { %s184_s5 = sand.u32 1, %s823_s14   ;;  %s517_s8 = sshll.u32 %s831_s16, 7 }
  0x31   : > { %s1148_s30 = smov (%p37_p3, %s35_s30), 0  ;;  %s516_s6 = sshll.u32 %s184_s5, 7 }
  0x32   : > { %s72_s7 = ssub.s32 %s831_s16, %s1148_s30  ;;  %s984_s10 = scalar_lea.hbm %s1116_s1, %s517_s8 }
  0x33   : > { %p74_p6 = scmp.eq.s32.totalorder %s72_s7, 0  ;;  %s188_s27 = scalar_lea.vmem [#allocation6], %s516_s6 }
  0x34   : > { %s197_s11 = sshll.u32 %s188_s27, 4  ;;  %s991_s26 = scalar_lea.sflag [#allocation7], %s184_s5  ;;  %s989_s11 = int_to_ptr.vmem [resolvable:$true] %s197_s11 }
  0x35   : > { %s987_s21 = scalar_select %p74_p6, %s823_s14, %s76_s4  }
  0x36   : > { %s719_s18 = scalar_lea.hbm %s984_s10, 2048  ;;  %p1134_p10 = scmp.ne.s32.totalorder %s1133_s29, 0 }
  0x37   : > { %p720_p8 = scmp.ne.s32.totalorder %s984_s10, %s719_s18  ;;  %s724_s28 = scalar_lea.hbm %s1116_s1, 4096 }
  0x38   : > { %p721_p12 = pneg %p1134_p10  ;;  %p725_p2 = scmp.lt.u32.totalorder %s984_s10, %s1116_s1 }
  0x39   : > { %p726_p7 = scmp.lt.u32.totalorder %s724_s28, %s719_s18  ;;  %p728_p11 = scmp.lt.u32.totalorder %s719_s18, %s984_s10 }
  0x3a   : > { %p722_p0 = pnand %p721_p12, %p720_p8 }
  0x3b   : > { %p727_p9 = por %p726_p7, %p725_p2 }
  0x3c   : > { %p723_p5 = pneg %p722_p0 }
  0x3d   : > { %p729_p13 = por %p728_p11, %p727_p9 }
  0x3f   : > { %p730_p4 = pnand %p729_p13, %p723_p5 }
  0x41   : > { %733 = shalt.err (!%p730_p4)
}
  0x42   : > { %s734_s4 = scalar_lea.vmem %s989_s11, 2048  ;;  %s840_s5 = smov [#allocation6]  }
  0x43   : > { %p735_p1 = scmp.ne.s32.totalorder %s989_s11, %s734_s4  ;;  %s739_s27 = sshll.u32 %s840_s5, 4  ;;  %s740_s27 = int_to_ptr.vmem [resolvable:$false] %s739_s27 }
  0x44   : > { %s741_s7 = scalar_lea.vmem %s740_s27, 4096  ;;  %p742_p8 = scmp.lt.s32.totalorder %s989_s11, %s740_s27 }
  0x45   : > { %p737_p3 = pnand %p735_p1, %p721_p12  ;;  %p743_p0 = scmp.lt.s32.totalorder %s741_s7, %s734_s4 }
  0x47   : > { %p738_p6 = pneg %p737_p3  ;;  %p744_p2 = por %p743_p0, %p742_p8 }
  0x49   : > { %p745_p7 = pnand %p744_p2, %p738_p6 }
  0x4b   : > { %748 = shalt.err (!%p745_p7)
}
  0x4c   : > { %s841_s18 = smov 256   ;;  %s1135_s8 = smov 128  }
  0x4d   : > { %627 = dma.hbm_to_vmem [thread:$0]  (!%p1134_p10), %s984_s10, 2048, %s989_s11, %s991_s26, %s841_s18, %s1135_s8, %s839_s19  }
  0x4e   : > { %p1136_p12 = scmp.ne.s32.totalorder %s1131_s25, 0 }
  0x4f   : > { %p1137_p5 = scmp.ne.s32.totalorder (!%p1136_p12), %s1126_s20, 0 }
  0x50   : > { %215 = sbr.rel (%p1136_p12) target bundleno = 358 (0x166), region = 32 }
  0x57   : > { %802 = dma.done.wait (%p1137_p5), [#allocation4], 256  }
  0x58   : > { %804 = vsyncadd (%p1137_p5), [#allocation4], 4294967040  ;;  %s1028_s28 = sand.u32 1, %s819_s13   ;;  %p1138_p10 = scmp.ne.s32.totalorder %s1128_s22, 0 }
  0x59   : > { %s520_s29 = sshll.u32 %s1028_s28, 7  ;;  %s222_s6 = scalar_lea.sflag [#allocation7], %s1028_s28 }
  0x5a   : > { %s1032_s9 = scalar_lea.vmem [#allocation6], %s520_s29 }
  0x5b   : > { %806 = dma.done.wait (%p1138_p10), %s222_s6, 2048  }
  0x5c   : > { %808 = vsyncadd (%p1138_p10), %s222_s6, 4294965248  ;;  %v259_v0 = vld [vmem:[%s1032_s9] sm:$0xff]  ;;  %v260_v1 = vld [vmem:[%s1032_s9 + $0x8] sm:$0xff]  ;;  %p253_p9 = scmp.lt.s32.totalorder %s827_s15, 1  ;;  %s521_s20 = sshll.u32 %s1028_s28, 4 }
  0x5d   : > { %v261_v2 = vld [vmem:[%s1032_s9 + $0x10] sm:$0xff]  ;;  %v580_v3 = vpack.c.bf16 %v260_v1, %v259_v0  ;;  %v262_v4 = vld [vmem:[%s1032_s9 + $0x18] sm:$0xff]  ;;  %v263_v6 = vld [vmem:[%s1032_s9 + $0x20] sm:$0xff]  ;;  %s250_s11 = scalar_lea.vmem [#allocation8], %s521_s20  ;;  %s524_s4 = sshll.u32 %s827_s15, 7 }
  0x5e   : > { %v584_v5 = vpack.c.bf16 %v262_v4, %v261_v2  ;;  %v264_v7 = vld [vmem:[%s1032_s9 + $0x28] sm:$0xff]  ;;  %v257_v9 = vld [vmem:[#allocation3] sm:$0xff]  ;;  %v266_v11 = vld [vmem:[%s1032_s9 + $0x38] sm:$0xff]  ;;  %s254_s22 = scalar_select %p253_p9, %s827_s15, 1 }
  0x5f   : > { %581 = vmatprep.subr.bf16.mxu0 %v580_v3  ;;  %v588_v8 = vpack.c.bf16 %v264_v7, %v263_v6  ;;  %v265_v10 = vld [vmem:[%s1032_s9 + $0x30] sm:$0xff]  ;;  %577 = vmatprep.mubr.f32.mxu0 %v257_v9  ;;  %v267_v13 = vld [vmem:[%s1032_s9 + $0x40] sm:$0xff]  ;;  %v268_v14 = vld [vmem:[%s1032_s9 + $0x48] sm:$0xff]  ;;  %s398_s26 = sshll.u32 %s250_s11, 4  ;;  %s1066_s7 = scalar_lea.hbm %s1118_s3, %s524_s4  ;;  %s1061_s26 = int_to_ptr.vmem [resolvable:$true] %s398_s26 }
  0x60   : > { %583 = vmatpush3.bf16.msra.mxu0 %v580_v3  ;;  %v592_v12 = vpack.c.bf16 %v266_v11, %v265_v10  ;;  %v596_v15 = vpack.c.bf16 %v268_v14, %v267_v13  ;;  %v269_v16 = vld [vmem:[%s1032_s9 + $0x50] sm:$0xff]  ;;  %v270_v17 = vld [vmem:[%s1032_s9 + $0x58] sm:$0xff]  ;;  %v271_v19 = vld [vmem:[%s1032_s9 + $0x60] sm:$0xff]  ;;  %s255_s10 = scalar_lea.vmem %s1117_s2, %s254_s22  ;;  %s383_s18 = scalar_lea.sflag [#allocation5], %s1028_s28 }
  0x61   : > { %585 = vmatprep.subr.bf16.mxu0 %v584_v5  ;;  %v600_v18 = vpack.c.bf16 %v270_v17, %v269_v16  ;;  %v272_v20 = vld [vmem:[%s1032_s9 + $0x68] sm:$0xff]  ;;  %v273_v22 = vld [vmem:[%s1032_s9 + $0x70] sm:$0xff]  ;;  %v274_v23 = vld [vmem:[%s1032_s9 + $0x78] sm:$0xff]  ;;  %s749_s8 = scalar_lea.vmem %s1061_s26, 256  ;;  %p1139_p13 = scmp.ne.s32.totalorder %s1129_s23, 0 }
  0x62   : > { %v604_v21 = vpack.c.bf16 %v272_v20, %v271_v19  ;;  %v608_v24 = vpack.c.bf16 %v274_v23, %v273_v22  ;;  %v258_v25 = vld [vmem:[#allocation3 + $0x8] sm:$0xff]  ;;  %v522_v26 = vld [vmem:[%s255_s10] ss:$0 sm:$0xff]  ;;  %p750_p11 = scmp.ne.s32.totalorder %s1061_s26, %s749_s8  ;;  %s842_s15 = smov [#allocation8]  }
  0x63   : > { %s753_s29 = sshll.u32 %s842_s15, 4  ;;  %s754_s29 = int_to_ptr.vmem [resolvable:$false] %s753_s29 }
  0x64   : > { %587 = vmatpush3.bf16.msra.mxu0 %v584_v5  ;;  %p751_p4 = pnand %p750_p11, %p1139_p13  ;;  %s755_s6 = scalar_lea.vmem %s754_s29, 512 }
  0x65   : > { %589 = vmatprep.subr.bf16.mxu0 %v588_v8  ;;  %p756_p3 = scmp.lt.s32.totalorder %s1061_s26, %s754_s29  ;;  %p757_p6 = scmp.lt.s32.totalorder %s755_s6, %s749_s8 }
  0x66   : > { %p752_p1 = pneg %p751_p4 }
  0x67   : > { %p758_p8 = por %p757_p6, %p756_p3 }
  0x68   : > { %591 = vmatpush3.bf16.msra.mxu0 %v588_v8 }
  0x69   : > { %593 = vmatprep.subr.bf16.mxu0 %v592_v12  ;;  %p759_p0 = pnand %p758_p8, %p752_p1 }
  0x6c   : > { %595 = vmatpush3.bf16.msra.mxu0 %v592_v12 }
  0x6d   : > { %597 = vmatprep.subr.bf16.mxu0 %v596_v15 }
  0x70   : > { %599 = vmatpush3.bf16.msra.mxu0 %v596_v15 }
  0x71   : > { %601 = vmatprep.subr.bf16.mxu0 %v600_v18 }
  0x74   : > { %603 = vmatpush3.bf16.msra.mxu0 %v600_v18 }
  0x75   : > { %605 = vmatprep.subr.bf16.mxu0 %v604_v21 }
  0x78   : > { %607 = vmatpush3.bf16.msra.mxu0 %v604_v21 }
  0x79   : > { %609 = vmatprep.subr.bf16.mxu0 %v608_v24 }
  0x7c   : > { %611 = vmatpush3.bf16.msra.mxu0 %v608_v24 }
  0x7f   : > { %578 = vmatmul.mubr.f32.vlgmr.msra.gmra.mrb[0].mxu0 %v258_v25 }
 0x152   : > { %v579_v27 = vpop.f32.mrb[0].mxu0 }
 0x153   : > { %v379_v28 = vadd.f32 %v579_v27, %v522_v26  ;;  %v341_v29 = vpop.f32.mrb[1].mxu0 }
 0x154   : > { %v378_v30 = vadd.f32 %v522_v26, %v341_v29 }
 0x155   : > { %381 = vst [vmem:[%s250_s11 + $0x8] sm:$0xff] %v379_v28 }
 0x156   : > { %380 = vst [vmem:[%s250_s11] sm:$0xff] %v378_v30 }
 0x157   : > { %762 = shalt.err (!%p759_p0)
}
 0x158   : > { %s763_s9 = scalar_lea.hbm %s1066_s7, 256  ;;  %s767_s25 = scalar_lea.hbm %s1118_s3, 512 }
 0x159   : > { %p764_p2 = scmp.ne.s32.totalorder %s1066_s7, %s763_s9  ;;  %p768_p5 = scmp.lt.u32.totalorder %s1066_s7, %s1118_s3 }
 0x15a   : > { %p769_p10 = scmp.lt.u32.totalorder %s767_s25, %s763_s9  ;;  %p771_p11 = scmp.lt.u32.totalorder %s763_s9, %s1066_s7 }
 0x15b   : > { %p765_p7 = pnand %p764_p2, %p1139_p13 }
 0x15c   : > { %p770_p9 = por %p769_p10, %p768_p5 }
 0x15d   : > { %p766_p12 = pneg %p765_p7 }
 0x15e   : > { %p772_p4 = por %p771_p11, %p770_p9 }
 0x160   : > { %p773_p1 = pnand %p772_p4, %p766_p12 }
 0x162   : > { %776 = shalt.err (!%p773_p1)
}
 0x163   : > { %s843_s11 = smov 128   ;;  %s844_s4 = smov 256  }
 0x164   : > { %s845_s5 = smov 8  }
 0x165   : > { %618 = dma.vmem_to_hbm [thread:$0]  (%p1139_p13), %s1061_s26, 256, %s1066_s7, %s383_s18, %s843_s11, %s844_s4, %s845_s5  }
 0x166 PF: > { %s413_s27 = sand.u32 1, %s815_s12   ;;  %p1140_p3 = scmp.ne.s32.totalorder %s1130_s24, 0 }
 0x167   : > { %p1141_p6 = scmp.ge.s32.totalorder %s835_s17, 2  ;;  %s414_s8 = scalar_lea.sflag [#allocation5], %s413_s27 }
 0x169   : > { %p629_p8 = pnand %p1141_p6, %p1140_p3 }
 0x16b   : > { %810 = dma.done.wait (!%p629_p8), %s414_s8, 256  }
 0x16c   : > { %812 = vsyncadd (!%p629_p8), %s414_s8, 4294967040  ;;  %s20_s17 = sadd.s32 1, %s835_s17   ;;  %s1142_s12 = smov %s819_s13 }
 0x16d   : > { %p17_p0 = scmp.ge.s32.totalorder %s20_s17, 4   ;;  %s1143_s13 = smov %s823_s14 }
 0x16e   : > { %s1144_s14 = smov %s987_s21  ;;  %s1145_s15 = smov %s831_s16 }
 0x16f   : > { %s1146_s16 = smov %s1148_s30  ;;  %19 = sbr.rel (!%p17_p0) target bundleno = 7 (0x7), region = 98 }
 0x176   :  { %419 = vsyncpa [#allocation4], 1 }
 0x177   :  { %421 = vsyncpa [#allocation4 + $0x1], 1 }
 0x178   :  { %422 = vsyncpa [#allocation7], 1 }
 0x179   :  { %424 = vsyncpa [#allocation7 + $0x1], 1 }
 0x17a   :  { %425 = vsyncpa [#allocation5], 1 }
 0x17b   :  { %427 = vsyncpa [#allocation5 + $0x1], 1 }

</bundles_post_ra>
